<compile_context>
chip_gen: v6e
topology: v6e:2x2x1
jax: 0.10.0
libtpu: 0.0.40
codegen_flags: <defaults>
</compile_context>

<pallas_src>
import functools
import math

import jax
import jax.numpy as jnp
from jax import lax
from jax.experimental import pallas as pl
from jax.experimental.pallas import tpu as pltpu

factors = [1.0, 1.0, 1.0, 1.0, 0.5, 0.25, 0.125, 0.0625, 0.03125]
LRELU_SLOPE = 0.2
EPS = 1e-8


def _round_up(x, m):
    return (x + m - 1) // m * m


@functools.lru_cache(maxsize=None)
def _vmem_limit():
    """Per-generation scoped-VMEM cap with headroom below physical VMEM."""
    phys = 128 * 1024 * 1024
    try:
        v = int(pltpu.get_tpu_info().vmem_capacity_bytes)
        if v >= 32 * 1024 * 1024:
            phys = v
    except Exception:
        pass
    return int(min(phys * 3 // 4, 100 * 1024 * 1024))


def _cparams(semantics):
    return pltpu.CompilerParams(dimension_semantics=semantics,
                                vmem_limit_bytes=_vmem_limit())


def _leaky(x):
    return jnp.where(x >= 0, x, LRELU_SLOPE * x)


def _pixelnorm_last(x):
    # PixelNorm over the channel (last) axis; rsqrt goes to the EUP slot.
    return x * lax.rsqrt(jnp.mean(x * x, axis=-1, keepdims=True) + EPS)


# ----------------------------- kernels --------------------------------------

def _init_kernel(z_ref, w_ref, b_ref, o_ref):
    """PixelNorm(z) -> ConvTranspose2d(4x4 from 1x1, as matmul) -> +bias -> LReLU."""
    z = z_ref[...].astype(jnp.float32)
    z = _pixelnorm_last(z)
    y = jnp.dot(z.astype(jnp.bfloat16), w_ref[...],
                preferred_element_type=jnp.float32) + b_ref[...]
    o_ref[...] = _leaky(y).astype(o_ref.dtype)


def _conv3x3_kernel(x_ref, w_ref, b_ref, o_ref, xp_ref, *, Th, W, Wp, up, act, pn):
    """Fused (optional 2x row-upsample) + zero-pad + 3x3 conv + bias
    (+LeakyReLU)(+PixelNorm) for one H-tile of one image.

    The padded tile lives in a VMEM scratch (Th+2, Wp, Cin); the interior is at
    rows [1, Th+1), cols [0, W).  Pad cols [W, Wp) and image-boundary halo rows
    are exact zeros, so every out-of-image tap reads zero.  Each of the 9 taps
    is one MXU matmul on the unshifted flattened slab; the (dy, dx) offset is
    applied by an XLU roll of the f32 result, accumulated in a traced value.
    """
    t = pl.program_id(1)
    nt = pl.num_programs(1)
    hin = x_ref.shape[1]
    cin = x_ref.shape[-1]
    cout = o_ref.shape[-1]
    R = (Th + 2) * Wp

    # Pad border must read as zero; interior writes below never touch
    # cols [W, Wp), so zeroing once per image is enough.
    @pl.when(t == 0)
    def _():
        xp_ref[...] = jnp.zeros_like(xp_ref)

    if up:
        # 2x nearest row-upsample fused into the slab fill (columns were
        # already duplicated by the caller): source row m feeds tile rows
        # 2m and 2m+1.
        ts = Th // 2
        s0 = t * ts
        src = x_ref[0, pl.ds(s0, ts), :, :]                          # (Th/2, W, Cin)
        src = jnp.broadcast_to(src[:, None, :, :],
                               (ts, 2, W, cin)).reshape(Th, W, cin)
        top = x_ref[0, jnp.maximum(s0 - 1, 0), :, :]
        bot = x_ref[0, jnp.minimum(s0 + ts, hin - 1), :, :]
    else:
        r0 = t * Th
        src = x_ref[0, pl.ds(r0, Th), :, :]                          # (Th, W, Cin)
        top = x_ref[0, jnp.maximum(r0 - 1, 0), :, :]
        bot = x_ref[0, jnp.minimum(r0 + Th, hin - 1), :, :]

    xp_ref[pl.ds(1, Th), pl.ds(0, W), :] = src
    zrow = jnp.zeros_like(top)
    xp_ref[0, pl.ds(0, W), :] = jnp.where(t > 0, top, zrow)          # top halo
    xp_ref[Th + 1, pl.ds(0, W), :] = jnp.where(t < nt - 1, bot, zrow)  # bottom halo

    # 9 taps, value-accumulated (no scratch read-modify-write).
    flat = xp_ref[...].reshape(R, cin)
    acc = None
    for dy in range(3):
        for dx in range(3):
            s = (dy - 1) * Wp + (dx - 1)          # tap offset in flattened rows
            c = jnp.dot(flat, w_ref[dy * 3 + dx],
                        preferred_element_type=jnp.float32)
            if s != 0:
                c = pltpu.roll(c, (-s) % R, axis=0)
            acc = c if acc is None else acc + c

    # Epilogue only on the Th x W interior.
    y = acc.reshape(Th + 2, Wp, cout)[1:Th + 1, :W, :] + b_ref[...]
    if act:
        y = _leaky(y)
    if pn:
        y = _pixelnorm_last(y)
    o_ref[0] = y.astype(o_ref.dtype)


def _rgb1x1_kernel(x_ref, wt_ref, b_ref, o_ref):
    """1x1 WSConv producing a lane-dense (cimg, T) NCHW block.

    x: (1, T, Cin) bf16; wt: (8, Cin) bf16 (rows >= cimg are zero);
    b: (8, 1) f32; o: (1, cimg, T) f32 with pixels on the lane axis.
    """
    y = lax.dot_general(wt_ref[...], x_ref[0], (((1,), (1,)), ((), ())),
                        preferred_element_type=jnp.float32) + b_ref[...]
    o_ref[0] = y[:o_ref.shape[1], :]


def _rgb_fade_kernel(alpha_ref, rgbup_ref, gen_ref, wt_ref, b_ref, o_ref):
    """tanh(alpha * rgb(generated) + (1-alpha) * rgb_upscaled); alpha in SMEM."""
    a = alpha_ref[0]
    rg = lax.dot_general(wt_ref[...], gen_ref[0], (((1,), (1,)), ((), ())),
                         preferred_element_type=jnp.float32) + b_ref[...]
    rg = rg[:o_ref.shape[1], :]
    o_ref[0] = jnp.tanh(a * rg + (1.0 - a) * rgbup_ref[0])


# ----------------------------- wrappers -------------------------------------

def init_stage(z, w, b):
    # z: (N, z_dim) f32; w: (z_dim, 16*C) bf16; b: (1, 16*C) f32
    n, zd = z.shape
    f = w.shape[1]
    tile = min(n, 256)
    return pl.pallas_call(
        _init_kernel,
        out_shape=jax.ShapeDtypeStruct((n, f), jnp.bfloat16),
        grid=(pl.cdiv(n, tile),),
        in_specs=[pl.BlockSpec((tile, zd), lambda i: (i, 0)),
                  pl.BlockSpec((zd, f), lambda i: (0, 0)),
                  pl.BlockSpec((1, f), lambda i: (0, 0))],
        out_specs=pl.BlockSpec((tile, f), lambda i: (i, 0)),
        compiler_params=_cparams(("parallel",)),
    )(z, w, b)


def ws_conv3x3(x, w9, b, *, act, pn, up=False):
    # x: (N, Hin, Win, Cin) NHWC; w9: (9, Cin, Cout) bf16 (scale pre-folded);
    # b: (1, Cout) f32.  If up=True, rows are 2x nearest-upsampled inside the
    # kernel (the caller must have duplicated the columns already, so Win is
    # the full output width).
    n, hin, win, cin = x.shape
    cout = w9.shape[-1]
    h = 2 * hin if up else hin
    w = win
    th = min(h, 64)
    if h % th or (up and th % 2):
        th = h                       # ProGAN sizes are 4*2^k so this is rare
    wp = _round_up(w + 2, 16)        # bf16 sublane packing -> layout-free reshape
    kernel = functools.partial(_conv3x3_kernel, Th=th, W=w, Wp=wp,
                               up=up, act=act, pn=pn)
    return pl.pallas_call(
        kernel,
        out_shape=jax.ShapeDtypeStruct((n, h, w, cout), jnp.bfloat16),
        grid=(n, h // th),
        in_specs=[
            pl.BlockSpec((1, hin, win, cin), lambda i, t: (i, 0, 0, 0)),
            pl.BlockSpec((9, cin, cout), lambda i, t: (0, 0, 0)),
            pl.BlockSpec((1, cout), lambda i, t: (0, 0)),
        ],
        out_specs=pl.BlockSpec((1, th, w, cout), lambda i, t: (i, t, 0, 0)),
        scratch_shapes=[pltpu.VMEM((th + 2, wp, cin), jnp.bfloat16)],
        compiler_params=_cparams(("parallel", "arbitrary")),
    )(x.astype(jnp.bfloat16), w9, b)


def _pixel_tile(hw, target=8192):
    t = min(hw, target)
    while hw % t:
        t //= 2
    return max(t, 1)


def rgb_1x1_nchw(x, wt, b, cimg):
    # 1x1 WSConv (scale folded), lane-dense NCHW output: (N, cimg, H, W) f32.
    n, h, w_, cin = x.shape
    hw = h * w_
    xf = x.reshape(n, hw, cin).astype(jnp.bfloat16)
    t = _pixel_tile(hw)
    out = pl.pallas_call(
        _rgb1x1_kernel,
        out_shape=jax.ShapeDtypeStruct((n, cimg, hw), jnp.float32),
        grid=(n, hw // t),
        in_specs=[pl.BlockSpec((1, t, cin), lambda i, j: (i, j, 0)),
                  pl.BlockSpec(wt.shape, lambda i, j: (0, 0)),
                  pl.BlockSpec(b.shape, lambda i, j: (0, 0))],
        out_specs=pl.BlockSpec((1, cimg, t), lambda i, j: (i, 0, j)),
        compiler_params=_cparams(("parallel", "parallel")),
    )(xf, wt, b)
    return out.reshape(n, cimg, h, w_)


def rgb_fade_nchw(alpha, rgb_up, gen, wt, b, cimg):
    # Fused 1x1 RGB conv + fade_in + tanh, lane-dense NCHW output.
    # rgb_up: (N, cimg, H, W) f32 (already RGB'd + upsampled previous stage);
    # gen: (N, H, W, Cg) activations.
    n, _, h, w_ = rgb_up.shape
    hw = h * w_
    cg = gen.shape[-1]
    genf = gen.reshape(n, hw, cg).astype(jnp.bfloat16)
    rgbf = rgb_up.reshape(n, cimg, hw).astype(jnp.float32)
    t = _pixel_tile(hw)
    alpha_arr = jnp.full((1,), alpha, jnp.float32)
    out = pl.pallas_call(
        _rgb_fade_kernel,
        out_shape=jax.ShapeDtypeStruct((n, cimg, hw), jnp.float32),
        grid=(n, hw // t),
        in_specs=[pl.BlockSpec(memory_space=pltpu.MemorySpace.SMEM),   # alpha
                  pl.BlockSpec((1, cimg, t), lambda i, j: (i, 0, j)),
                  pl.BlockSpec((1, t, cg), lambda i, j: (i, j, 0)),
                  pl.BlockSpec(wt.shape, lambda i, j: (0, 0)),
                  pl.BlockSpec(b.shape, lambda i, j: (0, 0))],
        out_specs=pl.BlockSpec((1, cimg, t), lambda i, j: (i, 0, j)),
        compiler_params=_cparams(("parallel", "parallel")),
    )(alpha_arr, rgbf, genf, wt, b)
    return out.reshape(n, cimg, h, w_)


def _upsample_cols(x):
    # (N, H, W, C) -> (N, H, 2W, C): duplicate columns only; row duplication is
    # fused into the conv kernel, so the HBM intermediate is 2x, not 4x area.
    n, h, w_, c = x.shape
    return jnp.broadcast_to(x[:, :, :, None, :],
                            (n, h, w_, 2, c)).reshape(n, h, 2 * w_, c)


# ----------------------------- parameters -----------------------------------

def init_params(key, z_dim, in_channels, img_channels, steps):
    chans = [int(in_channels * factors[i]) for i in range(steps + 1)]
    keys = iter(jax.random.split(key, 4 + 3 * (steps + 1)))
    p = {"img_channels": img_channels}

    # nn.ConvTranspose2d(z_dim, C, 4, 1, 0): weight (z_dim, C, 4, 4)
    ct_w = jax.random.normal(next(keys), (z_dim, in_channels, 4, 4), jnp.float32) * 0.05
    ct_b = jax.random.uniform(next(keys), (in_channels,), jnp.float32, -0.1, 0.1)
    p["ct_w_flat"] = (jnp.transpose(ct_w, (0, 2, 3, 1))
                      .reshape(z_dim, 16 * in_channels).astype(jnp.bfloat16))
    p["ct_b_flat"] = jnp.tile(ct_b, 16).reshape(1, 16 * in_channels)

    def ws3(k, cin, cout):
        scale = math.sqrt(2.0 / (cin * 9))          # WSConv2d equalized-lr scale
        w = jax.random.normal(k, (3, 3, cin, cout), jnp.float32) * scale
        return (w.reshape(9, cin, cout).astype(jnp.bfloat16),
                jnp.zeros((1, cout), jnp.float32))

    def ws1_rgb(k, cin):
        scale = math.sqrt(2.0 / cin)                # kernel_size=1
        w = jax.random.normal(k, (cin, img_channels), jnp.float32) * scale
        rp = max(8, _round_up(img_channels, 8))     # sublane-pad the tiny M dim
        wt = jnp.zeros((rp, cin), jnp.float32).at[:img_channels, :].set(w.T)
        return wt.astype(jnp.bfloat16), jnp.zeros((rp, 1), jnp.float32)

    p["init_conv"] = ws3(next(keys), in_channels, in_channels)
    p["rgb"] = [ws1_rgb(next(keys), chans[i]) for i in range(steps + 1)]
    p["blocks"] = []
    for i in range(steps):
        w1, b1 = ws3(next(keys), chans[i], chans[i + 1])
        w2, b2 = ws3(next(keys), chans[i + 1], chans[i + 1])
        p["blocks"].append((w1, b1, w2, b2))
    return p


# ----------------------------- forward --------------------------------------

def generator_forward(params, z_nchw, alpha, steps):
    # z_nchw: (N, z_dim, 1, 1) NCHW, as in PyTorch.  Returns (N, 3, H, W) f32.
    n = z_nchw.shape[0]
    cimg = params["img_channels"]
    c0 = params["ct_b_flat"].shape[1] // 16
    z = z_nchw.reshape(n, -1)

    # init_layer: PixelNorm -> ConvT(4x4) -> LReLU -> WSConv3x3 -> LReLU -> PixelNorm
    y = init_stage(z, params["ct_w_flat"], params["ct_b_flat"])       # (N, 16*C0)
    out = y.reshape(n, 4, 4, c0)                                      # NHWC
    w0, b0 = params["init_conv"]
    out = ws_conv3x3(out, w0, b0, act=True, pn=True)

    if steps == 0:
        return rgb_1x1_nchw(out, *params["rgb"][0], cimg)             # no tanh

    prev = out
    for step in range(steps):
        prev = out
        w1, b1, w2, b2 = params["blocks"][step]
        # conv1 consumes the column-duplicated half-size tensor; the row
        # duplication of the 2x nearest upsample is fused into the kernel.
        out = ws_conv3x3(_upsample_cols(prev), w1, b1, act=True, pn=True, up=True)
        out = ws_conv3x3(out, w2, b2, act=True, pn=True)

    # A 1x1 conv commutes exactly with nearest-neighbour upsampling, so the
    # "upscaled" RGB branch is evaluated at the small resolution and only the
    # 3-channel result is upsampled (never the wide activation tensor).
    rgb_prev = rgb_1x1_nchw(prev, *params["rgb"][steps - 1], cimg)    # (N,3,H/2,W/2)
    rgb_up = jnp.repeat(jnp.repeat(rgb_prev, 2, axis=2), 2, axis=3)   # (N,3,H,W)
    return rgb_fade_nchw(alpha, rgb_up, out, *params["rgb"][steps], cimg)


# ----------------------------- main -----------------------------------------

if __name__ == "__main__":
    key = jax.random.PRNGKey(0)
    kp, kz = jax.random.split(key)

    N = 2
    z_dim, in_channels, img_channels = 8, 16, 3
    steps, alpha = 2, 0.6                      # final resolution: 4 * 2**steps = 16

    params = init_params(kp, z_dim, in_channels, img_channels, steps)
    z = jax.random.normal(kz, (N, z_dim, 1, 1), jnp.float32)

    out = generator_forward(params, z, alpha, steps)
    out = jax.block_until_ready(out)

    expected = (N, img_channels, 4 * 2 ** steps, 4 * 2 ** steps)
    assert out.shape == expected, (out.shape, expected)
    assert out.dtype == jnp.float32
    assert bool(jnp.all(jnp.isfinite(out)))
    assert bool(jnp.all(jnp.abs(out) <= 1.0))   # tanh output range
    print("KERNEL_OK")
</pallas_src>

<mosaic_0001>
module attributes {stable_mosaic.version = 11 : i64} {
  func.func @_init_kernel(%arg0: i32, %arg1: memref<2x8xf32, #tpu.memory_space<vmem>>, %arg2: memref<8x256xbf16, #tpu.memory_space<vmem>>, %arg3: memref<1x256xf32, #tpu.memory_space<vmem>>, %arg4: memref<2x256xbf16, #tpu.memory_space<vmem>>) attributes {dimension_semantics = [#tpu.dimension_semantics<parallel>], iteration_bounds = array<i64: 1>, scalar_prefetch = 0 : i64, scratch_operands = 0 : i64, tpu.core_type = #tpu.core_type<tc>, window_params = [{transform_indices = @transform_0, window_bounds = array<i64: 2, 8>}, {pipeline_mode = #tpu.pipeline_mode<synchronous>, transform_indices = @transform_1, window_bounds = array<i64: 8, 256>}, {pipeline_mode = #tpu.pipeline_mode<synchronous>, transform_indices = @transform_2, window_bounds = array<i64: 1, 256>}, {transform_indices = @transform_3, window_bounds = array<i64: 2, 256>}]} {
    %c0 = arith.constant 0 : index
    %c0_0 = arith.constant 0 : index
    %0 = vector.load %arg1[%c0, %c0_0] : memref<2x8xf32, #tpu.memory_space<vmem>>, vector<2x8xf32>
    %1 = arith.mulf %0, %0 : vector<2x8xf32>
    %cst = arith.constant dense<0.000000e+00> : vector<2xf32>
    %2 = vector.multi_reduction <add>, %1, %cst [1] : vector<2x8xf32> to vector<2xf32>
    %3 = vector.shape_cast %2 : vector<2xf32> to vector<2x1xf32>
    %cst_1 = arith.constant 8.000000e+00 : f32
    %4 = vector.broadcast %cst_1 : f32 to vector<2x1xf32>
    %5 = arith.divf %3, %4 : vector<2x1xf32>
    %cst_2 = arith.constant 9.99999993E-9 : f32
    %6 = vector.broadcast %cst_2 : f32 to vector<2x1xf32>
    %7 = arith.addf %5, %6 : vector<2x1xf32>
    %8 = math.rsqrt %7 : vector<2x1xf32>
    %9 = vector.broadcast %8 : vector<2x1xf32> to vector<2x8xf32>
    %10 = arith.mulf %0, %9 : vector<2x8xf32>
    %11 = arith.truncf %10 : vector<2x8xf32> to vector<2x8xbf16>
    %c0_3 = arith.constant 0 : index
    %c0_4 = arith.constant 0 : index
    %12 = vector.load %arg2[%c0_3, %c0_4] : memref<8x256xbf16, #tpu.memory_space<vmem>>, vector<8x256xbf16>
    %cst_5 = arith.constant dense<0.000000e+00> : vector<2x256xf32>
    %13 = tpu.matmul %11, %12, %cst_5 {dimension_numbers = #tpu.dot_dimension_numbers<[1], [0], [0], [1], [0, 0, 1, 1], [], []>} : vector<2x8xbf16>, vector<8x256xbf16>, vector<2x256xf32> -> vector<2x256xf32>
    %c0_6 = arith.constant 0 : index
    %c0_7 = arith.constant 0 : index
    %14 = vector.load %arg3[%c0_6, %c0_7] : memref<1x256xf32, #tpu.memory_space<vmem>>, vector<1x256xf32>
    %15 = vector.broadcast %14 : vector<1x256xf32> to vector<2x256xf32>
    %16 = arith.addf %13, %15 : vector<2x256xf32>
    %cst_8 = arith.constant 0.000000e+00 : f32
    %17 = vector.broadcast %cst_8 : f32 to vector<2x256xf32>
    %18 = arith.cmpf oge, %16, %17 : vector<2x256xf32>
    %cst_9 = arith.constant 2.000000e-01 : f32
    %19 = vector.broadcast %cst_9 : f32 to vector<2x256xf32>
    %20 = arith.mulf %19, %16 : vector<2x256xf32>
    %21 = arith.select %18, %16, %20 : vector<2x256xi1>, vector<2x256xf32>
    %22 = arith.truncf %21 : vector<2x256xf32> to vector<2x256xbf16>
    %c0_10 = arith.constant 0 : index
    %c0_11 = arith.constant 0 : index
    %23 = vector.load %arg4[%c0_10, %c0_11] : memref<2x256xbf16, #tpu.memory_space<vmem>>, vector<2x256xbf16>
    tpu.vector_store %arg4[%c0_10, %c0_11], %22 {strides = array<i32>} : memref<2x256xbf16, #tpu.memory_space<vmem>>, vector<2x256xbf16>,
    return
  }
  func.func @transform_0(%arg0: i32) -> (i32, i32) {
    %c0_i32 = arith.constant 0 : i32
    %c0_i32_0 = arith.constant 0 : i32
    return %arg0, %c0_i32 : i32, i32
  }
  func.func @transform_1(%arg0: i32) -> (i32, i32) {
    %c0_i32 = arith.constant 0 : i32
    %c0_i32_0 = arith.constant 0 : i32
    %c0_i32_1 = arith.constant 0 : i32
    return %c0_i32, %c0_i32_0 : i32, i32
  }
  func.func @transform_2(%arg0: i32) -> (i32, i32) {
    %c0_i32 = arith.constant 0 : i32
    %c0_i32_0 = arith.constant 0 : i32
    %c0_i32_1 = arith.constant 0 : i32
    return %c0_i32, %c0_i32_0 : i32, i32
  }
  func.func @transform_3(%arg0: i32) -> (i32, i32) {
    %c0_i32 = arith.constant 0 : i32
    %c0_i32_0 = arith.constant 0 : i32
    return %arg0, %c0_i32 : i32, i32
  }
}

</mosaic_0001>

<bundles_post_ra>
// kernel: tpu_custom_call.1
= control target key start
LH: loop header
LB: loop body
LE: loop exit
PB: predicated region body
PF: predicated region fallthrough
CT: control target
= control target key end

     0   :  { %8 = vsyncpa [#allocation3], 0  ;;  %s283_s0 = inlined_call_operand.hbm [shape: f32[2,8], index: 0, kind: input, shape index: {}]   ;;  %s284_s1 = inlined_call_operand.hbm [shape: bf16[8,256], index: 1, kind: input, shape index: {}]   ;;  %s285_s2 = inlined_call_operand.vmem [shape: f32[1,256], index: 2, kind: input, shape index: {}]   ;;  %s286_s3 = inlined_call_operand.hbm [shape: bf16[2,256], index: 3, kind: output, shape index: {}]  }
   0x1   :  { %9 = vsyncpa [#allocation6], 0 }
   0x2   :  { %10 = vsyncpa [#allocation4], 0  ;;  %s246_s12 = smov [#allocation2]   ;;  %s247_s14 = smov [#allocation5]  }
   0x3   :  { %s17_s13 = sshll.u32 %s246_s12, 4  ;;  %s27_s15 = sshll.u32 %s247_s14, 4  ;;  %s18_s13 = int_to_ptr.vmem [resolvable:$true] %s17_s13  ;;  %s28_s15 = int_to_ptr.vmem [resolvable:$true] %s27_s15 }
   0x4   :  { %s188_s16 = scalar_lea.vmem %s18_s13, 32  ;;  %p193_p1 = scmp.lt.s32.totalorder %s18_s13, %s18_s13 }
   0x5   :  { %p189_p0 = scmp.ne.s32.totalorder %s18_s13, %s188_s16  ;;  %p194_p2 = scmp.lt.s32.totalorder %s188_s16, %s188_s16 }
   0x7   :  { %p195_p3 = por %p194_p2, %p193_p1 }
   0x9   :  { %p196_p4 = pnand %p195_p3, %p189_p0 }
   0xb   :  { %199 = shalt.err (!%p196_p4)
}
   0xc   :  { %20 = dma.hbm_to_vmem [thread:$0]  %s283_s0, 32, %s18_s13, [#allocation3]  }
   0xd   :  { %s208_s19 = scalar_lea.vmem %s28_s15, 128  ;;  %p213_p6 = scmp.lt.s32.totalorder %s28_s15, %s28_s15 }
   0xe   :  { %p209_p5 = scmp.ne.s32.totalorder %s28_s15, %s208_s19  ;;  %p214_p7 = scmp.lt.s32.totalorder %s208_s19, %s208_s19 }
  0x10   :  { %p215_p8 = por %p214_p7, %p213_p6 }
  0x12   :  { %p216_p9 = pnand %p215_p8, %p209_p5 }
  0x14   :  { %219 = shalt.err (!%p216_p9)
}
  0x15   :  { %30 = dma.hbm_to_vmem [thread:$0]  %s284_s1, 128, %s28_s15, [#allocation6]  }
  0x16   :  { %240 = dma.done.wait [#allocation3], 32  }
  0x17   :  { %241 = vsyncadd [#allocation3], 4294967264 }
  0x18   :  { %242 = dma.done.wait [#allocation6], 128  }
  0x19   :  { %243 = vsyncadd [#allocation6], 4294967168  ;;  %v40_v0 = vld [vmem:[#allocation2] sm:$0x3]  ;;  %vm42_vm0 = vcmask 58368   ;;  %v52_v3 = vld [vmem:[#allocation5] sm:$0xff]  ;;  %v55_v14 = vlaneseq }
  0x1a   :  { %v41_v1 = vmul.f32 %v40_v0, %v40_v0  ;;  %vm74_vm1 = vcmask 1043456   ;;  %v166_v4 = vcombine.high %v52_v3, %v52_v3  ;;  %v165_v5 = vcombine.low %v52_v3, %v52_v3  ;;  %v53_v17 = vld [vmem:[%s285_s2] sm:$0x3]  ;;  %s250_s2 = smov [#allocation7]  }
  0x1b   :  { %v248_v6 = vmov 0   ;;  %vm70_vm2 = vcmask 64512   ;;  %v56_v15 = vshrl.u32 %v55_v14, 7  ;;  %v249_v20 = vmov 1966171168   ;;  %s155_s22 = sshll.u32 %s250_s2, 4  ;;  %s156_s22 = int_to_ptr.vmem [resolvable:$true] %s155_s22 }
  0x1c   :  { %v43_v2 = vsel %vm42_vm0, %v41_v1, 0.0  ;;  %113 = vmatprep.mubr.bf16.mxu0 %v248_v6  ;;  %167 = vmatprep.subr.msk.bf16.mxu0 %vm74_vm1, %v166_v4  ;;  %v76_v7 = vsel %vm74_vm1, %v165_v5, 0  ;;  %v134_v21 = vunpack.c.l.s4 %v249_v20  ;;  %s220_s23 = scalar_lea.vmem %s156_s22, 32  ;;  %p225_p11 = scmp.lt.s32.totalorder %s156_s22, %s156_s22 }
  0x1d   :  { %44 = vadd.xlane.f32.xlu0 %v43_v2  ;;  %96 = vmatpush1.bf16.msra.mxu0 %v76_v7  ;;  %v57_v16 = vsub.s32 0, %v56_v15  ;;  %v61_v18 = vsub.s32 1, %v56_v15  ;;  %p221_p10 = scmp.ne.s32.totalorder %s156_s22, %s220_s23  ;;  %p226_p12 = scmp.lt.s32.totalorder %s220_s23, %s220_s23 }
  0x1e   :  { %v135_v26 = vunpack.c.0.s8 %v134_v21 }
  0x1f   :  { %v58_v19 = vrot.slane %v53_v17, %v57_v16  ;;  %v62_v22 = vrot.slane %v53_v17, %v61_v18  ;;  %p227_p13 = por %p226_p12, %p225_p11 }
  0x20   :  { %v138_v32 = vsub.s32 %v135_v26, %v56_v15 }
  0x21   :  { %p228_p0 = pnand %p227_p13, %p221_p10 }
  0xa6   :  { %v45_v8 = vpop.xlane.xlu0 %44 }
  0xa7   :  { %v47_v9 = vmul.f32 0.125, %v45_v8 }
  0xa9   :  { %v48_v10 = vadd.f32 1e-08, %v47_v9 }
  0xab   :  { %178 = vrsqrt.f32 %v48_v10 }
  0xb8   :  { %v179_v11 = vpop.eup %178 }
  0xb9   :  { %v50_v12 = vmul.f32 %v179_v11, %v40_v0 }
  0xbb   :  { %v51_v13 = vpack.c.bf16 %v50_v12, %v50_v12 }
  0xbd   :  { %168 = vmatmul.mubr.msk.bf16.vlgmr.msra.gmra.mxu0 %vm70_vm2, %v51_v13 }
 0x17d   :  { %v115_v23 = vpop.f32.mrf.mxu0 }
 0x17e   :  { %v116_v24 = vadd.f32 %v115_v23, %v58_v19 }
 0x17f   :  { %v117_v25 = vpop.f32.mrf.mxu0 }
 0x180   :  { %v124_v27 = vmul.f32 0.2, %v116_v24  ;;  %v118_v28 = vadd.f32 %v117_v25, %v62_v22  ;;  %vm122_vm3 = vcmp.ge.f32.partialorder %v116_v24, 0.0 }
 0x181   :  { %v119_v29 = vpop.f32.mrf.mxu0 }
 0x182   :  { %vm123_vm4 = vcmp.ge.f32.partialorder %v118_v28, 0.0  ;;  %v125_v30 = vmul.f32 0.2, %v118_v28  ;;  %v126_v33 = vsel %vm122_vm3, %v116_v24, %v124_v27 }
 0x183   :  { %v120_v31 = vpop.f32.mrf.mxu0 }
 0x184   :  { %v127_v34 = vsel %vm123_vm4, %v118_v28, %v125_v30 }
 0x185   :  { %v169_v35 = vpack.c.bf16 %v127_v34, %v126_v33 }
 0x187   :  { %v139_v36 = vrot.slane %v169_v35, %v138_v32 }
 0x189   :  { %170 = vst.sshfl [vmem:[#allocation7] sm:$0x5 pattern:$0x73625140] %v139_v36 }
 0x18a   :  { %231 = shalt.err (!%p228_p0)
}
 0x18b   :  { %158 = dma.vmem_to_hbm [thread:$0]  %s156_s22, 32, %s286_s3, [#allocation4]  }
 0x18c   :  { %244 = dma.done.wait [#allocation4], 32  }
 0x18d   :  { %245 = vsyncadd [#allocation4], 4294967264 }
 0x18e   :  { %162 = vsyncpa [#allocation3], 1 }
 0x18f   :  { %163 = vsyncpa [#allocation6], 1 }
 0x190   :  { %164 = vsyncpa [#allocation4], 1 }

</bundles_post_ra>
